<compile_context>
chip_gen: v7x
topology: tpu7x:2x2x1
jax: 0.10.0
libtpu: 0.0.40
codegen_flags: <defaults>
</compile_context>

<pallas_src>
import functools

import jax
import jax.numpy as jnp
from jax.experimental import pallas as pl
from jax.experimental.pallas import tpu as pltpu


def attention_kernel(x_ref, w1_ref, b1_ref, wqkv_ref, bqkv_ref, hm_ref,
                     wo_ref, bo_ref, w2_ref, b2_ref, out_ref, *, B, S, num_heads):
    E = wqkv_ref.shape[1]
    hd = E // num_heads
    scale = 1.0 / (float(hd) ** 0.5)

    # ---- linear1 over all B*S rows (one matmul, bf16 feeds, f32 accumulation) ----
    x = x_ref[...]                                                        # (B*S, Din) bf16
    h = jnp.einsum('sd,ed->se', x, w1_ref[...],
                   preferred_element_type=jnp.float32) + b1_ref[...]      # (B*S, E) f32
    h16 = h.astype(jnp.bfloat16)

    # ---- packed Q/K/V in-projection: one (B*S, E) x (3E, E)^T matmul ----
    qkv = jnp.einsum('se,fe->sf', h16, wqkv_ref[...],
                     preferred_element_type=jnp.float32) + bqkv_ref[...]  # (B*S, 3E) f32
    # NOTE: the reshapes below are layout-preserving because S is a multiple of 8.
    q_all = qkv[:, 0:E].reshape(B, S, E)
    k = qkv[:, E:2 * E].reshape(B, S, E)
    v = qkv[:, 2 * E:3 * E].reshape(B, S, E)
    # Only the last time step's query is consumed downstream; fold 1/sqrt(hd) into it.
    q = q_all[:, S - 1:S, :] * scale                                      # (B, 1, E) f32

    # ---- per-head score reduction via the block-diagonal head map (bf16 MXU feeds) ----
    hm = hm_ref[...]                                                      # (E, H) bf16 0/1
    qk = (q * k).astype(jnp.bfloat16).reshape(B * S, E)                   # broadcast over S
    scores = jnp.einsum('se,eh->sh', qk, hm,
                        preferred_element_type=jnp.float32
                        ).reshape(B, S, num_heads)                        # (B, S, H) f32

    # softmax over the keys (axis=1), per batch / head, f32 throughout
    m = jnp.max(scores, axis=1, keepdims=True)                            # (B, 1, H)
    p = jnp.exp(scores - m)                                               # (B, S, H)
    l = jnp.sum(p, axis=1, keepdims=True)                                 # (B, 1, H)
    p = p * pl.reciprocal(l, approx=False)                                # exact 1/x
    # TODO(synk): attention-weight dropout (dropout_1) omitted -- eval-mode semantics.

    # broadcast head probabilities back to E lanes and weight V on the VPU
    p16 = p.astype(jnp.bfloat16).reshape(B * S, num_heads)
    p_lanes = jnp.einsum('sh,eh->se', p16, hm,
                         preferred_element_type=jnp.float32).reshape(B, S, E)
    o = jnp.sum(p_lanes * v, axis=1)                                      # (B, E) f32

    # ---- out-projection + linear2 on the B remaining rows ----
    attn = jnp.einsum('be,fe->bf', o.astype(jnp.bfloat16), wo_ref[...],
                      preferred_element_type=jnp.float32) + bo_ref[...]   # (B, E)
    y = jnp.einsum('be,oe->bo', attn.astype(jnp.bfloat16), w2_ref[...],
                   preferred_element_type=jnp.float32) + b2_ref[...]      # (B, O)
    out_ref[...] = y.astype(out_ref.dtype)                                # single (B, O) store


def attention_forward(x, params, num_heads):
    B, S, Din = x.shape
    E = params['wq'].shape[0]
    O = params['w2'].shape[0]
    hd = E // num_heads

    bf16 = lambda w: w.astype(jnp.bfloat16)
    x2 = x.reshape(B * S, Din).astype(jnp.bfloat16)            # stream the input as bf16
    w1 = bf16(params['w1'])
    wqkv = bf16(jnp.concatenate([params['wq'], params['wk'], params['wv']], axis=0))  # (3E, E)
    bqkv = jnp.concatenate([params['bq'], params['bk'], params['bv']], axis=1)        # (1, 3E)
    wo = bf16(params['wo'])
    w2 = bf16(params['w2'])
    # head_map[e, h] = 1 iff lane e belongs to head h (0/1 -> exact in bf16)
    head_map = (jnp.arange(E)[:, None] // hd
                == jnp.arange(num_heads)[None, :]).astype(jnp.bfloat16)               # (E, H)

    args = (x2, w1, params['b1'], wqkv, bqkv, head_map,
            wo, params['bo'], w2, params['b2'])

    def full_spec(arr):                       # full-array block, constant index -> VMEM-resident
        shp = arr.shape
        return pl.BlockSpec(shp, lambda i: (0,) * len(shp))

    kernel = functools.partial(attention_kernel, B=B, S=S, num_heads=num_heads)
    out = pl.pallas_call(
        kernel,
        grid=(1,),                                             # single invocation, no per-batch grid
        out_shape=jax.ShapeDtypeStruct((B, O), jnp.float32),
        in_specs=[full_spec(a) for a in args],
        out_specs=pl.BlockSpec((B, O), lambda i: (0, 0)),
        compiler_params=pltpu.CompilerParams(dimension_semantics=("arbitrary",)),
    )(*args)
    return out


def reference_forward(x, params, num_heads):
    """Plain-JAX f32 reference mirroring the PyTorch forward (eval mode)."""
    h = jnp.einsum('bsd,hd->bsh', x, params['w1']) + params['b1']
    q = jnp.einsum('bsh,eh->bse', h, params['wq']) + params['bq']
    k = jnp.einsum('bsh,eh->bse', h, params['wk']) + params['bk']
    v = jnp.einsum('bsh,eh->bse', h, params['wv']) + params['bv']
    B, S, E = q.shape
    hd = E // num_heads
    qh = q.reshape(B, S, num_heads, hd).transpose(0, 2, 1, 3)
    kh = k.reshape(B, S, num_heads, hd).transpose(0, 2, 1, 3)
    vh = v.reshape(B, S, num_heads, hd).transpose(0, 2, 1, 3)
    s = jnp.einsum('bhqd,bhkd->bhqk', qh, kh) / jnp.sqrt(hd)
    p = jax.nn.softmax(s, axis=-1)
    o = jnp.einsum('bhqk,bhkd->bhqd', p, vh).transpose(0, 2, 1, 3).reshape(B, S, E)
    attn_out = jnp.einsum('bse,oe->bso', o, params['wo']) + params['bo']
    last = attn_out[:, -1, :]
    return last @ params['w2'].T + params['b2'][0]


def init_params(key, input_size, hidden_size, output_size):
    ks = jax.random.split(key, 13)
    def u(k, shape, fan_in):
        bound = 1.0 / (fan_in ** 0.5)
        return jax.random.uniform(k, shape, jnp.float32, -bound, bound)
    E = hidden_size
    return {
        'w1': u(ks[0], (E, input_size), input_size),
        'b1': u(ks[1], (1, E), input_size),
        'wq': u(ks[2], (E, E), E),
        'wk': u(ks[3], (E, E), E),
        'wv': u(ks[4], (E, E), E),
        'bq': u(ks[5], (1, E), E),
        'bk': u(ks[6], (1, E), E),
        'bv': u(ks[7], (1, E), E),
        'wo': u(ks[8], (E, E), E),
        'bo': u(ks[9], (1, E), E),
        'w2': u(ks[10], (output_size, E), E),
        'b2': u(ks[11], (1, output_size), E),
    }


if __name__ == "__main__":
    config = dict(input_size=16, hidden_size=32, num_heads=4,
                  dropout_1=0.1, output_size=8)
    B, S = 2, 8

    key = jax.random.PRNGKey(0)
    kx, kp = jax.random.split(key)
    x = jax.random.normal(kx, (B, S, config['input_size']), jnp.float32)
    params = init_params(kp, config['input_size'], config['hidden_size'],
                         config['output_size'])

    y = attention_forward(x, params, config['num_heads'])
    y = jax.block_until_ready(y)

    y_ref = reference_forward(x, params, config['num_heads'])
    assert y.shape == (B, config['output_size'])
    # bf16 MXU feeds (f32 accumulation) vs the all-f32 reference -> relaxed tolerance.
    assert jnp.allclose(y, y_ref, atol=2e-2, rtol=2e-2), "mismatch vs reference"

    print("KERNEL_OK")
</pallas_src>

<mosaic_0001>
module attributes {stable_mosaic.version = 11 : i64} {
  func.func @attention_kernel(%arg0: i32, %arg1: memref<16x16xbf16, #tpu.memory_space<vmem>>, %arg2: memref<32x16xbf16, #tpu.memory_space<vmem>>, %arg3: memref<1x32xf32, #tpu.memory_space<vmem>>, %arg4: memref<96x32xbf16, #tpu.memory_space<vmem>>, %arg5: memref<1x96xf32, #tpu.memory_space<vmem>>, %arg6: memref<32x4xbf16, #tpu.memory_space<vmem>>, %arg7: memref<32x32xbf16, #tpu.memory_space<vmem>>, %arg8: memref<1x32xf32, #tpu.memory_space<vmem>>, %arg9: memref<8x32xbf16, #tpu.memory_space<vmem>>, %arg10: memref<1x8xf32, #tpu.memory_space<vmem>>, %arg11: memref<2x8xf32, #tpu.memory_space<vmem>>) attributes {dimension_semantics = [#tpu.dimension_semantics<arbitrary>], iteration_bounds = array<i64: 1>, scalar_prefetch = 0 : i64, scratch_operands = 0 : i64, tpu.core_type = #tpu.core_type<tc>, window_params = [{pipeline_mode = #tpu.pipeline_mode<synchronous>, transform_indices = @transform_0, window_bounds = array<i64: 16, 16>}, {pipeline_mode = #tpu.pipeline_mode<synchronous>, transform_indices = @transform_1, window_bounds = array<i64: 32, 16>}, {pipeline_mode = #tpu.pipeline_mode<synchronous>, transform_indices = @transform_2, window_bounds = array<i64: 1, 32>}, {pipeline_mode = #tpu.pipeline_mode<synchronous>, transform_indices = @transform_3, window_bounds = array<i64: 96, 32>}, {pipeline_mode = #tpu.pipeline_mode<synchronous>, transform_indices = @transform_4, window_bounds = array<i64: 1, 96>}, {pipeline_mode = #tpu.pipeline_mode<synchronous>, transform_indices = @transform_5, window_bounds = array<i64: 32, 4>}, {pipeline_mode = #tpu.pipeline_mode<synchronous>, transform_indices = @transform_6, window_bounds = array<i64: 32, 32>}, {pipeline_mode = #tpu.pipeline_mode<synchronous>, transform_indices = @transform_7, window_bounds = array<i64: 1, 32>}, {pipeline_mode = #tpu.pipeline_mode<synchronous>, transform_indices = @transform_8, window_bounds = array<i64: 8, 32>}, {pipeline_mode = #tpu.pipeline_mode<synchronous>, transform_indices = @transform_9, window_bounds = array<i64: 1, 8>}, {pipeline_mode = #tpu.pipeline_mode<synchronous>, transform_indices = @transform_10, window_bounds = array<i64: 2, 8>}]} {
    %c0 = arith.constant 0 : index
    %c0_0 = arith.constant 0 : index
    %0 = vector.load %arg1[%c0, %c0_0] : memref<16x16xbf16, #tpu.memory_space<vmem>>, vector<16x16xbf16>
    %c0_1 = arith.constant 0 : index
    %c0_2 = arith.constant 0 : index
    %1 = vector.load %arg2[%c0_1, %c0_2] : memref<32x16xbf16, #tpu.memory_space<vmem>>, vector<32x16xbf16>
    "tpu.trace_start"() <{level = 10 : i32, message = "sd,ed->se"}> : () -> ()
    %cst = arith.constant dense<0.000000e+00> : vector<16x32xf32>
    %2 = tpu.matmul %0, %1, %cst {dimension_numbers = #tpu.dot_dimension_numbers<[1], [1], [0], [0], [0, 0, 1, 0], [], []>} : vector<16x16xbf16>, vector<32x16xbf16>, vector<16x32xf32> -> vector<16x32xf32>
    "tpu.trace_stop"() : () -> ()
    %c0_3 = arith.constant 0 : index
    %c0_4 = arith.constant 0 : index
    %3 = vector.load %arg3[%c0_3, %c0_4] : memref<1x32xf32, #tpu.memory_space<vmem>>, vector<1x32xf32>
    %4 = vector.broadcast %3 : vector<1x32xf32> to vector<16x32xf32>
    %5 = arith.addf %2, %4 : vector<16x32xf32>
    %6 = arith.truncf %5 : vector<16x32xf32> to vector<16x32xbf16>
    %c0_5 = arith.constant 0 : index
    %c0_6 = arith.constant 0 : index
    %7 = vector.load %arg4[%c0_5, %c0_6] : memref<96x32xbf16, #tpu.memory_space<vmem>>, vector<96x32xbf16>
    "tpu.trace_start"() <{level = 10 : i32, message = "se,fe->sf"}> : () -> ()
    %cst_7 = arith.constant dense<0.000000e+00> : vector<16x96xf32>
    %8 = tpu.matmul %6, %7, %cst_7 {dimension_numbers = #tpu.dot_dimension_numbers<[1], [1], [0], [0], [0, 0, 1, 0], [], []>} : vector<16x32xbf16>, vector<96x32xbf16>, vector<16x96xf32> -> vector<16x96xf32>
    "tpu.trace_stop"() : () -> ()
    %c0_8 = arith.constant 0 : index
    %c0_9 = arith.constant 0 : index
    %9 = vector.load %arg5[%c0_8, %c0_9] : memref<1x96xf32, #tpu.memory_space<vmem>>, vector<1x96xf32>
    %10 = vector.broadcast %9 : vector<1x96xf32> to vector<16x96xf32>
    %11 = arith.addf %8, %10 : vector<16x96xf32>
    %12 = vector.extract_strided_slice %11 {offsets = [0, 0], sizes = [16, 32], strides = [1, 1]} : vector<16x96xf32> to vector<16x32xf32>
    %13 = vector.shape_cast %12 : vector<16x32xf32> to vector<2x8x32xf32>
    %14 = vector.extract_strided_slice %11 {offsets = [0, 32], sizes = [16, 32], strides = [1, 1]} : vector<16x96xf32> to vector<16x32xf32>
    %15 = vector.shape_cast %14 : vector<16x32xf32> to vector<2x8x32xf32>
    %16 = vector.extract_strided_slice %11 {offsets = [0, 64], sizes = [16, 32], strides = [1, 1]} : vector<16x96xf32> to vector<16x32xf32>
    %17 = vector.shape_cast %16 : vector<16x32xf32> to vector<2x8x32xf32>
    %18 = vector.extract_strided_slice %13 {offsets = [0, 7, 0], sizes = [2, 1, 32], strides = [1, 1, 1]} : vector<2x8x32xf32> to vector<2x1x32xf32>
    %cst_10 = arith.constant 0.353553385 : f32
    %19 = vector.broadcast %cst_10 : f32 to vector<2x1x32xf32>
    %20 = arith.mulf %18, %19 : vector<2x1x32xf32>
    %c0_11 = arith.constant 0 : index
    %c0_12 = arith.constant 0 : index
    %21 = vector.load %arg6[%c0_11, %c0_12] : memref<32x4xbf16, #tpu.memory_space<vmem>>, vector<32x4xbf16>
    %22 = vector.broadcast %20 : vector<2x1x32xf32> to vector<2x8x32xf32>
    %23 = arith.mulf %22, %15 : vector<2x8x32xf32>
    %24 = arith.truncf %23 : vector<2x8x32xf32> to vector<2x8x32xbf16>
    %25 = vector.shape_cast %24 : vector<2x8x32xbf16> to vector<16x32xbf16>
    "tpu.trace_start"() <{level = 10 : i32, message = "se,eh->sh"}> : () -> ()
    %cst_13 = arith.constant dense<0.000000e+00> : vector<16x4xf32>
    %26 = tpu.matmul %25, %21, %cst_13 {dimension_numbers = #tpu.dot_dimension_numbers<[1], [0], [0], [1], [0, 0, 1, 1], [], []>} : vector<16x32xbf16>, vector<32x4xbf16>, vector<16x4xf32> -> vector<16x4xf32>
    "tpu.trace_stop"() : () -> ()
    %27 = vector.shape_cast %26 : vector<16x4xf32> to vector<2x8x4xf32>
    %cst_14 = arith.constant dense<0xFF800000> : vector<2x4xf32>
    %28 = vector.multi_reduction <maximumf>, %27, %cst_14 [1] : vector<2x8x4xf32> to vector<2x4xf32>
    %29 = vector.shape_cast %28 : vector<2x4xf32> to vector<2x1x4xf32>
    %30 = vector.broadcast %29 : vector<2x1x4xf32> to vector<2x8x4xf32>
    %31 = arith.subf %27, %30 : vector<2x8x4xf32>
    %32 = math.exp %31 : vector<2x8x4xf32>
    %cst_15 = arith.constant dense<0.000000e+00> : vector<2x4xf32>
    %33 = vector.multi_reduction <add>, %32, %cst_15 [1] : vector<2x8x4xf32> to vector<2x4xf32>
    %34 = vector.shape_cast %33 : vector<2x4xf32> to vector<2x1x4xf32>
    %35 = tpu.reciprocal %34 : vector<2x1x4xf32> -> vector<2x1x4xf32>
    %36 = vector.broadcast %35 : vector<2x1x4xf32> to vector<2x8x4xf32>
    %37 = arith.mulf %32, %36 : vector<2x8x4xf32>
    %38 = arith.truncf %37 : vector<2x8x4xf32> to vector<2x8x4xbf16>
    %39 = vector.shape_cast %38 : vector<2x8x4xbf16> to vector<16x4xbf16>
    "tpu.trace_start"() <{level = 10 : i32, message = "sh,eh->se"}> : () -> ()
    %cst_16 = arith.constant dense<0.000000e+00> : vector<16x32xf32>
    %40 = tpu.matmul %39, %21, %cst_16 {dimension_numbers = #tpu.dot_dimension_numbers<[1], [1], [0], [0], [0, 0, 1, 0], [], []>} : vector<16x4xbf16>, vector<32x4xbf16>, vector<16x32xf32> -> vector<16x32xf32>
    "tpu.trace_stop"() : () -> ()
    %41 = vector.shape_cast %40 : vector<16x32xf32> to vector<2x8x32xf32>
    %42 = arith.mulf %41, %17 : vector<2x8x32xf32>
    %cst_17 = arith.constant dense<0.000000e+00> : vector<2x32xf32>
    %43 = vector.multi_reduction <add>, %42, %cst_17 [1] : vector<2x8x32xf32> to vector<2x32xf32>
    %44 = arith.truncf %43 : vector<2x32xf32> to vector<2x32xbf16>
    %c0_18 = arith.constant 0 : index
    %c0_19 = arith.constant 0 : index
    %45 = vector.load %arg7[%c0_18, %c0_19] : memref<32x32xbf16, #tpu.memory_space<vmem>>, vector<32x32xbf16>
    "tpu.trace_start"() <{level = 10 : i32, message = "be,fe->bf"}> : () -> ()
    %cst_20 = arith.constant dense<0.000000e+00> : vector<2x32xf32>
    %46 = tpu.matmul %44, %45, %cst_20 {dimension_numbers = #tpu.dot_dimension_numbers<[1], [1], [0], [0], [0, 0, 1, 0], [], []>} : vector<2x32xbf16>, vector<32x32xbf16>, vector<2x32xf32> -> vector<2x32xf32>
    "tpu.trace_stop"() : () -> ()
    %c0_21 = arith.constant 0 : index
    %c0_22 = arith.constant 0 : index
    %47 = vector.load %arg8[%c0_21, %c0_22] : memref<1x32xf32, #tpu.memory_space<vmem>>, vector<1x32xf32>
    %48 = vector.broadcast %47 : vector<1x32xf32> to vector<2x32xf32>
    %49 = arith.addf %46, %48 : vector<2x32xf32>
    %50 = arith.truncf %49 : vector<2x32xf32> to vector<2x32xbf16>
    %c0_23 = arith.constant 0 : index
    %c0_24 = arith.constant 0 : index
    %51 = vector.load %arg9[%c0_23, %c0_24] : memref<8x32xbf16, #tpu.memory_space<vmem>>, vector<8x32xbf16>
    "tpu.trace_start"() <{level = 10 : i32, message = "be,oe->bo"}> : () -> ()
    %cst_25 = arith.constant dense<0.000000e+00> : vector<2x8xf32>
    %52 = tpu.matmul %50, %51, %cst_25 {dimension_numbers = #tpu.dot_dimension_numbers<[1], [1], [0], [0], [0, 0, 1, 0], [], []>} : vector<2x32xbf16>, vector<8x32xbf16>, vector<2x8xf32> -> vector<2x8xf32>
    "tpu.trace_stop"() : () -> ()
    %c0_26 = arith.constant 0 : index
    %c0_27 = arith.constant 0 : index
    %53 = vector.load %arg10[%c0_26, %c0_27] : memref<1x8xf32, #tpu.memory_space<vmem>>, vector<1x8xf32>
    %54 = vector.broadcast %53 : vector<1x8xf32> to vector<2x8xf32>
    %55 = arith.addf %52, %54 : vector<2x8xf32>
    %c0_28 = arith.constant 0 : index
    %c0_29 = arith.constant 0 : index
    %56 = vector.load %arg11[%c0_28, %c0_29] : memref<2x8xf32, #tpu.memory_space<vmem>>, vector<2x8xf32>
    tpu.vector_store %arg11[%c0_28, %c0_29], %55 {strides = array<i32>} : memref<2x8xf32, #tpu.memory_space<vmem>>, vector<2x8xf32>,
    return
  }
  func.func @transform_0(%arg0: i32) -> (i32, i32) {
    %c0_i32 = arith.constant 0 : i32
    %c0_i32_0 = arith.constant 0 : i32
    %c0_i32_1 = arith.constant 0 : i32
    return %c0_i32, %c0_i32_0 : i32, i32
  }
  func.func @transform_1(%arg0: i32) -> (i32, i32) {
    %c0_i32 = arith.constant 0 : i32
    %c0_i32_0 = arith.constant 0 : i32
    %c0_i32_1 = arith.constant 0 : i32
    return %c0_i32, %c0_i32_0 : i32, i32
  }
  func.func @transform_2(%arg0: i32) -> (i32, i32) {
    %c0_i32 = arith.constant 0 : i32
    %c0_i32_0 = arith.constant 0 : i32
    %c0_i32_1 = arith.constant 0 : i32
    return %c0_i32, %c0_i32_0 : i32, i32
  }
  func.func @transform_3(%arg0: i32) -> (i32, i32) {
    %c0_i32 = arith.constant 0 : i32
    %c0_i32_0 = arith.constant 0 : i32
    %c0_i32_1 = arith.constant 0 : i32
    return %c0_i32, %c0_i32_0 : i32, i32
  }
  func.func @transform_4(%arg0: i32) -> (i32, i32) {
    %c0_i32 = arith.constant 0 : i32
    %c0_i32_0 = arith.constant 0 : i32
    %c0_i32_1 = arith.constant 0 : i32
    return %c0_i32, %c0_i32_0 : i32, i32
  }
  func.func @transform_5(%arg0: i32) -> (i32, i32) {
    %c0_i32 = arith.constant 0 : i32
    %c0_i32_0 = arith.constant 0 : i32
    %c0_i32_1 = arith.constant 0 : i32
    return %c0_i32, %c0_i32_0 : i32, i32
  }
  func.func @transform_6(%arg0: i32) -> (i32, i32) {
    %c0_i32 = arith.constant 0 : i32
    %c0_i32_0 = arith.constant 0 : i32
    %c0_i32_1 = arith.constant 0 : i32
    return %c0_i32, %c0_i32_0 : i32, i32
  }
  func.func @transform_7(%arg0: i32) -> (i32, i32) {
    %c0_i32 = arith.constant 0 : i32
    %c0_i32_0 = arith.constant 0 : i32
    %c0_i32_1 = arith.constant 0 : i32
    return %c0_i32, %c0_i32_0 : i32, i32
  }
  func.func @transform_8(%arg0: i32) -> (i32, i32) {
    %c0_i32 = arith.constant 0 : i32
    %c0_i32_0 = arith.constant 0 : i32
    %c0_i32_1 = arith.constant 0 : i32
    return %c0_i32, %c0_i32_0 : i32, i32
  }
  func.func @transform_9(%arg0: i32) -> (i32, i32) {
    %c0_i32 = arith.constant 0 : i32
    %c0_i32_0 = arith.constant 0 : i32
    %c0_i32_1 = arith.constant 0 : i32
    return %c0_i32, %c0_i32_0 : i32, i32
  }
  func.func @transform_10(%arg0: i32) -> (i32, i32) {
    %c0_i32 = arith.constant 0 : i32
    %c0_i32_0 = arith.constant 0 : i32
    %c0_i32_1 = arith.constant 0 : i32
    return %c0_i32, %c0_i32_0 : i32, i32
  }
}

</mosaic_0001>

<bundles_post_ra>
// kernel: tpu_custom_call.1
= control target key start
LH: loop header
LB: loop body
LE: loop exit
PB: predicated region body
PF: predicated region fallthrough
CT: control target
= control target key end

     0   :  { %v736_v1 = vmov 0.0   ;;  %vm65_vm0 = vcmask 130048   ;;  %vm737_vm1 = vmmov 0   ;;  %vm166_vm2 = vcmask 261120   ;;  %s914_s0 = inlined_call_operand.vmem [shape: bf16[16,16], index: 0, kind: input, shape index: {}]   ;;  %s915_s1 = inlined_call_operand.vmem [shape: bf16[32,16], index: 1, kind: input, shape index: {}]   ;;  %s916_s2 = inlined_call_operand.vmem [shape: f32[1,32], index: 2, kind: input, shape index: {}]   ;;  %s917_s3 = inlined_call_operand.vmem [shape: bf16[96,32], index: 3, kind: input, shape index: {}]   ;;  %s918_s4 = inlined_call_operand.vmem [shape: f32[1,96], index: 4, kind: input, shape index: {}]   ;;  %s919_s5 = inlined_call_operand.vmem [shape: bf16[32,4], index: 5, kind: input, shape index: {}]   ;;  %s920_s6 = inlined_call_operand.vmem [shape: bf16[32,32], index: 6, kind: input, shape index: {}]   ;;  %s921_s7 = inlined_call_operand.vmem [shape: f32[1,32], index: 7, kind: input, shape index: {}]   ;;  %s922_s8 = inlined_call_operand.vmem [shape: bf16[8,32], index: 8, kind: input, shape index: {}]   ;;  %s923_s9 = inlined_call_operand.vmem [shape: f32[1,8], index: 9, kind: input, shape index: {}]   ;;  %s924_s10 = inlined_call_operand.hbm [shape: f32[2,8], index: 10, kind: output, shape index: {}]  }
   0x1   :  { %v691_v0 = vld [vmem:[%s915_s1] sm:$0xff]   ;;  %632 = vmatprep.subr.bf16.mxu0 %v736_v1  ;;  %640 = vmatprep.subr.bf16.mxu1 %v736_v1  ;;  %v692_v3 = vld [vmem:[%s915_s1 + $0x8] sm:$0xff]  }
   0x2   :  { %v70_v2 = vsel %vm65_vm0, %v691_v0, 0  ;;  %636 = vmatprep.mubr.msk.bf16.mxu0 %vm737_vm1, %v736_v1  ;;  %v694_v4 = vld [vmem:[%s917_s3] sm:$0xff]   ;;  %652 = vmatprep.mubr.msk.bf16.mxu1 %vm737_vm1, %v736_v1  ;;  %v695_v6 = vld [vmem:[%s917_s3 + $0x8] sm:$0xff]   ;;  %v73_v7 = vsel %vm65_vm0, %v692_v3, 0 }
   0x3   :  { %633 = vmatpush3.bf16.xpose.msra.mxu0 %v70_v2  ;;  %v171_v5 = vsel %vm166_vm2, %v694_v4, 0  ;;  %v174_v8 = vsel %vm166_vm2, %v695_v6, 0 }
   0x4   :  { %634 = vmatprep.subr.bf16.mxu0 %v736_v1  ;;  %641 = vmatpush3.bf16.xpose.msra.mxu1 %v171_v5 }
   0x5   :  { %642 = vmatprep.subr.bf16.mxu1 %v736_v1 }
   0xb   :  { %635 = vmatpush3.bf16.xpose.msra.mxu0 %v73_v7 }
   0xc   :  { %656 = vmatprep.subr.bf16.mxu0 %v736_v1 }
   0xd   :  { %15 = vsyncpa [#allocation3], 0  ;;  %v693_v9 = vld [vmem:[%s914_s0] sm:$0xff]   ;;  %643 = vmatpush3.bf16.xpose.msra.mxu1 %v174_v8  ;;  %v696_v10 = vld [vmem:[%s917_s3 + $0x10] sm:$0xff]   ;;  %s738_s15 = smov 64   ;;  %s739_s16 = smov 96   ;;  %v235_v35 = vlaneseq }
   0xe   :  { %644 = vmatprep.subr.bf16.mxu1 %v736_v1  ;;  %v177_v11 = vsel %vm166_vm2, %v696_v10, 0  ;;  %v697_v12 = vld [vmem:[%s917_s3 + $0x18] sm:$0xff]   ;;  %v698_v14 = vld [vmem:[%s917_s3 + $0x20] sm:$0xff]   ;;  %v699_v16 = vld [vmem:[%s917_s3 + $0x28] sm:$0xff]   ;;  %vm316_vm3 = vcmask 31744   ;;  %vm451_vm4 = vcmask 1041409  }
   0xf   :  { %v180_v13 = vsel %vm166_vm2, %v697_v12, 0  ;;  %v183_v15 = vsel %vm166_vm2, %v698_v14, 0  ;;  %v186_v17 = vsel %vm166_vm2, %v699_v16, 0  ;;  %v584_v18 = vld [vmem:[%s916_s2] ss:$0 sm:$0xff]  ;;  %v701_v27 = vld [vmem:[%s919_s5 + $0x8] sm:$0xff]  }
  0x10   :  { %v700_v26 = vld [vmem:[%s919_s5] sm:$0xff]   ;;  %v236_v36 = vshrl.u32 %v235_v35, 7  ;;  %v369_v48 = vsel %vm316_vm3, %v701_v27, 0  ;;  %s740_s22 = smov [#allocation2]   ;;  %vm568_vm5 = vcmask 58368  }
  0x11   :  { %v589_v28 = vld [vmem:[%s918_s4] ss:$0 sm:$0xff]  ;;  %v366_v47 = vsel %vm316_vm3, %v700_v26, 0  ;;  %s576_s23 = sshll.u32 %s740_s22, 4  ;;  %s577_s23 = int_to_ptr.vmem [resolvable:$true] %s576_s23 }
  0x12   :  { %637 = vmatmul.mubr.msk.bf16.vlgmr.msra.gmra.mrb[0].mxu0 %vm65_vm0, %v693_v9  ;;  %v237_v37 = vsub.s32 7, %v236_v36  ;;  %p717_p1 = scmp.lt.s32.totalorder %s577_s23, %s577_s23 }
  0x13   :  { %660 = vmatprep.mubr.msk.bf16.mxu0 %vm737_vm1, %v736_v1  ;;  %657 = vmatpush3.bf16.msra.mxu0 %v700_v26 }
  0x14   :  { %658 = vmatprep.subr.bf16.mxu0 %v736_v1 }
  0x15   :  { %645 = vmatpush3.bf16.xpose.msra.mxu1 %v177_v11 }
  0x16   :  { %646 = vmatprep.subr.bf16.mxu1 %v736_v1 }
  0x17   :  { %659 = vmatpush3.bf16.msra.mxu0 %v701_v27 }
  0x18   :  { %664 = vmatprep.subr.bf16.mxu0 %v736_v1 }
  0x1d   :  { %647 = vmatpush3.bf16.xpose.msra.mxu1 %v180_v13 }
  0x1e   :  { %648 = vmatprep.subr.bf16.mxu1 %v736_v1 }
  0x25   :  { %649 = vmatpush3.bf16.xpose.msra.mxu1 %v183_v15 }
  0x26   :  { %650 = vmatprep.subr.bf16.mxu1 %v736_v1 }
  0x2d   :  { %651 = vmatpush3.bf16.xpose.msra.mxu1 %v186_v17 }
  0x2e   :  { %680 = vmatprep.subr.bf16.mxu1 %v736_v1 }
  0xe5   :  { %v109_v19 = vpop.f32.mrb[0].mxu0 }
  0xe6   :  { %v638_v20 = vpop.f32.mrb[1].mxu0  ;;  %v110_v22 = vadd.f32 %v584_v18, %v109_v19 }
  0xe7   :  { %v112_v21 = vpop.f32.mrb[2].mxu0 }
  0xe8   :  { %v113_v23 = vadd.f32 %v584_v18, %v112_v21  ;;  %v639_v24 = vpop.f32.mrb[3].mxu0 }
  0xea   :  { %v116_v25 = vpack.c.bf16 %v113_v23, %v110_v22 }
  0xec   :  { %653 = vmatmul.mubr.msk.bf16.vlgmr.msra.gmra.mrb[0].mxu1 %vm166_vm2, %v116_v25 }
  0xed   :  { %682 = vmatprep.mubr.msk.bf16.mxu1 %vm737_vm1, %v736_v1 }
 0x1bf   :  { %v222_v29 = vpop.f32.mrb[0].mxu1 }
 0x1c0   :  { %v223_v30 = vadd.f32 %v589_v28, %v222_v29  ;;  %v654_v31 = vpop.f32.mrb[1].mxu1  ;;  %v702_v29 = vld [vmem:[%s920_s6] sm:$0xff]  }
 0x1c1   :  { %v225_v32 = vpop.f32.mrb[2].mxu1  ;;  %v703_v31 = vld [vmem:[%s920_s6 + $0x8] sm:$0xff]  }
 0x1c2   :  { %412 = vrot.lane.b32.xlu1 %v223_v30, %s738_s15  ;;  %245 = vrot.lane.b32.xlu0 %v223_v30, %s739_s16  ;;  %v655_v33 = vpop.f32.mrb[3].mxu1  ;;  %v226_v34 = vadd.f32 %v589_v28, %v225_v32  ;;  %v229_v38 = vmul.f32 0.35355338, %v223_v30  ;;  %v468_v30 = vsel %vm166_vm2, %v702_v29, 0  ;;  %v471_v32 = vsel %vm166_vm2, %v703_v31, 0 }
 0x1c3   :  { %v514_v33 = vld [vmem:[%s922_s8] sm:$0xf] }
 0x1c4   :  { %v230_v39 = vmul.f32 0.35355338, %v226_v34  ;;  %v238_v41 = vrot.slane %v229_v38, %v237_v37 }
 0x1c6   :  { %414 = vrot.lane.b32.xlu1 %v226_v34, %s738_s15  ;;  %247 = vrot.lane.b32.xlu0 %v226_v34, %s739_s16  ;;  %v242_v42 = vrot.slane %v230_v39, %v237_v37  ;;  %v526_v34 = vsel %vm166_vm2, %v514_v33, 0 }
 0x1c7   :  { %681 = vmatpush3.bf16.xpose.msra.mxu1 %v526_v34 }
 0x234   :  { %v246_v40 = vpop.permute.xlu0 %245  ;;  %v413_v35 = vpop.permute.xlu1 %412 }
 0x235   :  { %v251_v44 = vmul.f32 %v246_v40, %v238_v41 }
 0x238   :  { %v248_v43 = vpop.permute.xlu0 %247  ;;  %v415_v39 = vpop.permute.xlu1 %414 }
 0x239   :  { %v252_v45 = vmul.f32 %v248_v43, %v242_v42 }
 0x23b   :  { %v609_v46 = vpack.c.bf16 %v252_v45, %v251_v44 }
 0x23d   :  { %661 = vmatmul.mubr.msk.bf16.vlgmr.msra.gmra.mrb[4].mxu0 %vm166_vm2, %v609_v46 }
 0x23e   :  { %668 = vmatprep.mubr.msk.bf16.mxu0 %vm737_vm1, %v736_v1  ;;  %665 = vmatpush3.bf16.xpose.msra.mxu0 %v366_v47 }
 0x23f   :  { %666 = vmatprep.subr.bf16.mxu0 %v736_v1 }
 0x246   :  { %667 = vmatpush3.bf16.xpose.msra.mxu0 %v369_v48 }
 0x247   :  { %672 = vmatprep.subr.bf16.mxu0 %v736_v1 }
 0x310   :  { %v309_v49 = vpop.f32.mrb[4].mxu0 }
 0x311   :  { %v317_v50 = vsel %vm316_vm3, %v309_v49, -inf  ;;  %v662_v51 = vpop.f32.mrb[5].mxu0 }
 0x312   :  { %v318_v52 = vrot.slane %v317_v50, 4  ;;  %v312_v53 = vpop.f32.mrb[6].mxu0 }
 0x313   :  { %v324_v54 = vsel %vm316_vm3, %v312_v53, -inf  ;;  %v663_v55 = vpop.f32.mrb[7].mxu0 }
 0x314   :  { %v319_v56 = vmax.f32 %v317_v50, %v318_v52  ;;  %v325_v57 = vrot.slane %v324_v54, 4 }
 0x316   :  { %v320_v58 = vrot.slane %v319_v56, 2  ;;  %v326_v59 = vmax.f32 %v324_v54, %v325_v57 }
 0x318   :  { %v321_v60 = vmax.f32 %v319_v56, %v320_v58  ;;  %v327_v61 = vrot.slane %v326_v59, 2 }
 0x31a   :  { %v322_v62 = vrot.slane %v321_v60, 1  ;;  %v328_v63 = vmax.f32 %v326_v59, %v327_v61 }
 0x31c   :  { %v323_v0 = vmax.f32 %v321_v60, %v322_v62  ;;  %v329_v2 = vrot.slane %v328_v63, 1  ;;  %v603_v62 = vld [vmem:[%s921_s7] ss:$0 sm:$0xff]  ;;  %s712_s7 = scalar_lea.vmem %s577_s23, 32 }
 0x31d   :  { %p713_p0 = scmp.ne.s32.totalorder %s577_s23, %s712_s7  ;;  %p718_p2 = scmp.lt.s32.totalorder %s712_s7, %s712_s7 }
 0x31e   :  { %v331_v3 = vsub.f32 %v309_v49, %v323_v0  ;;  %v330_v4 = vmax.f32 %v328_v63, %v329_v2 }
 0x31f   :  { %p719_p3 = por %p718_p2, %p717_p1 }
 0x320   :  { %v333_v5 = vmul.f32 1.442695, %v331_v3  ;;  %v332_v6 = vsub.f32 %v312_v53, %v330_v4 }
 0x321   :  { %p720_p4 = pnand %p719_p3, %p713_p0 }
 0x322   :  { %704 = vpow2.f32 %v333_v5  ;;  %v335_v7 = vmul.f32 1.442695, %v332_v6  ;;  %v607_v6 = vld [vmem:[%s923_s9] ss:$0 sm:$0xff] }
 0x324   :  { %706 = vpow2.f32 %v335_v7 }
 0x32c   :  { %v705_v8 = vpop.eup %704 }
 0x32d   :  { %v337_v9 = vsel %vm316_vm3, %v705_v8, 0.0 }
 0x32e   :  { %v707_v10 = vpop.eup %706  ;;  %v338_v11 = vrot.slane %v337_v9, 4 }
 0x32f   :  { %v344_v12 = vsel %vm316_vm3, %v707_v10, 0.0 }
 0x330   :  { %v339_v13 = vadd.f32 %v338_v11, %v337_v9  ;;  %v345_v14 = vrot.slane %v344_v12, 4 }
 0x332   :  { %v340_v15 = vrot.slane %v339_v13, 2  ;;  %v346_v16 = vadd.f32 %v345_v14, %v344_v12 }
 0x334   :  { %v341_v17 = vadd.f32 %v340_v15, %v339_v13  ;;  %v347_v18 = vrot.slane %v346_v16, 2 }
 0x336   :  { %v342_v19 = vrot.slane %v341_v17, 1  ;;  %v348_v20 = vadd.f32 %v347_v18, %v346_v16 }
 0x338   :  { %v343_v21 = vadd.f32 %v342_v19, %v341_v17  ;;  %v349_v22 = vrot.slane %v348_v20, 1 }
 0x33a   :  { %708 = vrcp.f32 %v343_v21  ;;  %v350_v23 = vadd.f32 %v349_v22, %v348_v20 }
 0x33c   :  { %710 = vrcp.f32 %v350_v23 }
 0x344   :  { %v709_v24 = vpop.eup %708 }
 0x345   :  { %v353_v26 = vmul.f32 %v709_v24, %v705_v8 }
 0x346   :  { %v711_v25 = vpop.eup %710 }
 0x347   :  { %v354_v27 = vmul.f32 %v711_v25, %v707_v10 }
 0x349   :  { %v610_v28 = vpack.c.bf16 %v354_v27, %v353_v26 }
 0x34b   :  { %669 = vmatmul.mubr.msk.bf16.vlgmr.msra.gmra.mrb[8].mxu0 %vm316_vm3, %v610_v28 }
 0x34c   :  { %676 = vmatprep.mubr.msk.bf16.mxu0 %vm737_vm1, %v736_v1  ;;  %673 = vmatpush3.bf16.xpose.msra.mxu0 %v468_v30 }
 0x34d   :  { %674 = vmatprep.subr.bf16.mxu0 %v736_v1 }
 0x354   :  { %675 = vmatpush3.bf16.xpose.msra.mxu0 %v471_v32 }
 0x41e   :  { %v405_v36 = vpop.f32.mrb[8].mxu0 }
 0x41f   :  { %v418_v37 = vmul.f32 %v413_v35, %v405_v36  ;;  %v670_v38 = vpop.f32.mrb[9].mxu0 }
 0x420   :  { %v408_v1 = vpop.f32.mrb[10].mxu0 }
 0x421   :  { %v420_v40 = vsel %vm166_vm2, %v418_v37, 0.0  ;;  %v419_v41 = vmul.f32 %v415_v39, %v408_v1  ;;  %v671_v42 = vpop.f32.mrb[11].mxu0 }
 0x422   :  { %v421_v43 = vrot.slane %v420_v40, 4 }
 0x423   :  { %v427_v44 = vsel %vm166_vm2, %v419_v41, 0.0 }
 0x424   :  { %v422_v45 = vadd.f32 %v421_v43, %v420_v40  ;;  %v428_v46 = vrot.slane %v427_v44, 4 }
 0x426   :  { %v423_v47 = vrot.slane %v422_v45, 2  ;;  %v429_v48 = vadd.f32 %v428_v46, %v427_v44 }
 0x428   :  { %v424_v49 = vadd.f32 %v423_v47, %v422_v45  ;;  %v430_v50 = vrot.slane %v429_v48, 2 }
 0x42a   :  { %v425_v51 = vrot.slane %v424_v49, 1  ;;  %v431_v52 = vadd.f32 %v430_v50, %v429_v48 }
 0x42c   :  { %v426_v53 = vadd.f32 %v425_v51, %v424_v49  ;;  %v432_v54 = vrot.slane %v431_v52, 1 }
 0x42e   :  { %v434_v55 = vpack.c.bf16 %v426_v53, %v426_v53  ;;  %v433_v56 = vadd.f32 %v432_v54, %v431_v52 }
 0x430   :  { %v435_v57 = vpack.c.bf16 %v433_v56, %v433_v56  ;;  %v449_v58 = vunpack.c.l.b16 %v434_v55 }
 0x432   :  { %v450_v59 = vunpack.c.l.b16 %v435_v57 }
 0x434   :  { %v452_v60 = vsel %vm451_vm4, %v450_v59, %v449_v58 }
 0x435   :  { %v453_v61 = vpack.c.b16 %v452_v60, %v452_v60 }
 0x437   :  { %677 = vmatmul.mubr.msk.bf16.vlgmr.msra.gmra.mrb[12].mxu0 %vm166_vm2, %v453_v61 }
 0x50a   :  { %v507_v63 = vpop.f32.mrb[12].mxu0 }
 0x50b   :  { %v508_v0 = vadd.f32 %v603_v62, %v507_v63  ;;  %v678_v2 = vpop.f32.mrb[13].mxu0 }
 0x50c   :  { %v510_v3 = vpop.f32.mrb[14].mxu0 }
 0x50d   :  { %v513_v4 = vpack.c.bf16 %v508_v0, %v508_v0  ;;  %v679_v5 = vpop.f32.mrb[15].mxu0 }
 0x50f   :  { %683 = vmatmul.mubr.msk.bf16.vlgmr.msra.gmra.mrb[4].mxu1 %vm166_vm2, %v513_v4 }
 0x5e2   :  { %v562_v7 = vpop.f32.mrb[4].mxu1 }
 0x5e3   :  { %v563_v8 = vadd.f32 %v607_v6, %v562_v7  ;;  %v684_v9 = vpop.f32.mrb[5].mxu1 }
 0x5e4   :  { %v565_v10 = vpop.f32.mrb[6].mxu1 }
 0x5e5   :  { %v685_v11 = vpop.f32.mrb[7].mxu1  ;;  %569 = vst.msk [vmem:[#allocation2] sm:$0x3] %vm568_vm5, %v563_v8 }
 0x5e6   :  { %723 = shalt.err (!%p720_p4)
}
 0x5e7   :  { %s724_s9 = scalar_lea.hbm %s924_s10, 32 }
 0x5e8   :  { %p725_p5 = scmp.ne.s32.totalorder %s924_s10, %s724_s9  ;;  %p728_p6 = scmp.lt.u32.totalorder %s724_s9, %s924_s10 }
 0x5ea   :  { %p730_p7 = pnand %p728_p6, %p725_p5 }
 0x5ec   :  { %733 = shalt.err (!%p730_p7)
}
 0x5ed   :  { %579 = dma.vmem_to_hbm [thread:$0]  %s577_s23, 32, %s924_s10, [#allocation3]  }
 0x5ee   :  { %734 = dma.done.wait [#allocation3], 32  }
 0x5ef   :  { %735 = vsyncadd [#allocation3], 4294967264 }
 0x5f0   :  { %583 = vsyncpa [#allocation3], 1 }

</bundles_post_ra>
